<compile_context>
chip_gen: v6e
topology: v6e:2x2x1
jax: 0.10.0
libtpu: 0.0.40
codegen_flags: <defaults>
</compile_context>

<pallas_src>
import jax
import jax.numpy as jnp
from jax import lax
from jax.experimental import pallas as pl
from jax.experimental.pallas import tpu as pltpu


def _round_up(x, m):
    return (x + m - 1) // m * m


# ---------------------------------------------------------------------------
# Pallas kernel: streamed token-sum + fused linear head (matmuls at finalize).
# ---------------------------------------------------------------------------
def _make_head_kernel(TN, N_total, mask_tail):
    def _head_kernel(cls_ref, patch_ref, w_cls_ref, w_patch_ref, b_ref,
                     o_ref, sum_ref):
        n = pl.program_id(1)

        @pl.when(n == 0)
        def _():
            sum_ref[...] = jnp.zeros_like(sum_ref)

        # pure streamed sum over this N chunk (f32 accumulation)
        x = patch_ref[...]                                  # (TB, TN, D)
        if mask_tail:
            pos = lax.broadcasted_iota(jnp.int32, (1, TN, 1), 1) + n * TN
            x = jnp.where(pos < N_total, x, jnp.zeros_like(x))
        sum_ref[...] += jnp.sum(x.astype(jnp.float32), axis=1)

        # finalize: cls matmul + bias + (1/N-scaled) patch projection, once
        @pl.when(n == pl.num_programs(1) - 1)
        def _():
            acc = jnp.dot(cls_ref[...], w_cls_ref[...],
                          preferred_element_type=jnp.float32) + b_ref[...]
            acc = acc + jnp.dot(sum_ref[...].astype(w_patch_ref.dtype),
                                w_patch_ref[...],
                                preferred_element_type=jnp.float32)
            o_ref[...] = acc.astype(o_ref.dtype)

    return _head_kernel


def linear_classifier_head(cls_tokens, patch_tokens, w, b, *,
                           compute_dtype=jnp.bfloat16,
                           block_b=128, block_n=2048):
    """DINOv2 linear-probe head (layers=4).

    cls_tokens:   list of 4 arrays [B, D]
    patch_tokens: [B, N, D]  (streamed untouched, any float dtype)
    w:            [K, 5*D]   (PyTorch nn.Linear weight layout)
    b:            [K]
    returns logits [B, K] float32.
    """
    B, N, D = patch_tokens.shape
    K = w.shape[0]
    assert w.shape[1] == 5 * D

    patch_itemsize = jnp.dtype(patch_tokens.dtype).itemsize
    cdt_itemsize = jnp.dtype(compute_dtype).itemsize
    K_pad = _round_up(K, 128)                      # lane-dense output stores

    # ---- generation-aware VMEM budget --------------------------------------
    try:
        info = pltpu.get_tpu_info()
        vmem_cap = int(getattr(info, "vmem_capacity_bytes", 64 << 20))
    except Exception:
        vmem_cap = 64 << 20                        # conservative (v7x) default
    if vmem_cap <= 0:
        vmem_cap = 64 << 20
    budget = (vmem_cap * 3) // 4                   # headroom for compiler scratch

    def vmem_est(tb, tn, patch_bufs, weight_bufs):
        return (patch_bufs * tb * tn * D * patch_itemsize     # patch stream
                + 2 * tb * 4 * D * cdt_itemsize               # cls slab
                + weight_bufs * 5 * D * K_pad * cdt_itemsize  # resident weights
                + weight_bufs * K_pad * 4                     # bias
                + 2 * tb * K_pad * 4                          # f32 output block
                + tb * D * 4)                                 # f32 sum scratch

    # ---- tile sizing: 16-multiples, shrink TB before TN --------------------
    TB = min(_round_up(block_b, 16), _round_up(B, 16))
    TN = min(_round_up(block_n, 16), _round_up(N, 16))
    while vmem_est(TB, TN, 2, 1) > budget and TB > 64:
        TB = max(64, _round_up(TB // 2, 16))
    while vmem_est(TB, TN, 2, 1) > budget and TN > 16:
        TN = max(16, _round_up(TN // 2, 16))
    while vmem_est(TB, TN, 2, 1) > budget and TB > 16:
        TB = max(16, _round_up(TB // 2, 16))
    # keep >= 2 batch tiles when B allows it (feed both v7x TensorCores)
    if B > 16 and pl.cdiv(B, TB) < 2:
        TB = min(TB, max(16, _round_up((B + 1) // 2, 16)))

    grid = (pl.cdiv(B, TB), pl.cdiv(N, TN))
    mask_tail = (N % TN) != 0

    # ---- operand prep (small tensors only; the [B,N,D] stream is untouched) -
    cls_cat = jnp.concatenate(list(cls_tokens), axis=1).astype(compute_dtype)
    w_t = jnp.asarray(w, jnp.float32).T                               # [5D, K]
    w_cls = jnp.pad(w_t[:4 * D, :],
                    ((0, 0), (0, K_pad - K))).astype(compute_dtype)
    w_patch = jnp.pad(w_t[4 * D:, :] * (1.0 / N),
                      ((0, 0), (0, K_pad - K))).astype(compute_dtype)
    bias = jnp.pad(jnp.asarray(b, jnp.float32),
                   (0, K_pad - K)).reshape(1, K_pad)                  # f32

    kernel = _make_head_kernel(TN, N, mask_tail)

    # deeper pipelining on the patch stream when per-step chunks are small
    patch_buf_count = 3 if (grid[1] >= 4 and
                            TB * TN * D * patch_itemsize < (2 << 20)) else 2

    est = vmem_est(TB, TN, patch_buf_count, 1)
    vmem_limit = int(min(max(est + (8 << 20), 32 << 20), vmem_cap))

    cost = pl.CostEstimate(
        flops=int(grid[0] * 2 * TB * 5 * D * K_pad
                  + grid[0] * grid[1] * TB * TN * D),
        transcendentals=0,
        bytes_accessed=int(B * N * D * patch_itemsize
                           + B * 4 * D * cdt_itemsize
                           + 5 * D * K_pad * cdt_itemsize
                           + K_pad * 4 + B * K_pad * 4),
    )

    def run(use_pipeline_modes):
        res_kw = {"pipeline_mode": pl.Buffered(1)} if use_pipeline_modes else {}
        patch_kw = ({"pipeline_mode": pl.Buffered(patch_buf_count)}
                    if (use_pipeline_modes and patch_buf_count != 2) else {})
        in_specs = [
            pl.BlockSpec((TB, 4 * D), lambda i, n: (i, 0)),                  # cls slab
            pl.BlockSpec((TB, TN, D), lambda i, n: (i, n, 0), **patch_kw),   # patch stream
            pl.BlockSpec((4 * D, K_pad), lambda i, n: (0, 0), **res_kw),     # resident W_cls
            pl.BlockSpec((D, K_pad), lambda i, n: (0, 0), **res_kw),         # resident W_patch
            pl.BlockSpec((1, K_pad), lambda i, n: (0, 0), **res_kw),         # resident bias
        ]
        return pl.pallas_call(
            kernel,
            out_shape=jax.ShapeDtypeStruct((B, K_pad), jnp.float32),
            grid_spec=pltpu.PrefetchScalarGridSpec(
                num_scalar_prefetch=0,
                grid=grid,
                in_specs=in_specs,
                out_specs=pl.BlockSpec((TB, K_pad), lambda i, n: (i, 0)),
                scratch_shapes=[pltpu.VMEM((TB, D), jnp.float32)],
            ),
            compiler_params=pltpu.CompilerParams(
                dimension_semantics=("parallel", "arbitrary"),
                vmem_limit_bytes=vmem_limit,
            ),
            cost_estimate=cost,
        )(cls_cat, patch_tokens, w_cls, w_patch, bias)

    try:
        out = run(True)
    except Exception:
        # pipeline_mode knobs not supported by this jax version -> default buffering
        out = run(False)

    return out[:, :K]


# ---------------------------------------------------------------------------
# Synthetic deterministic backbone stand-in (plain JAX glue).
# TODO(synk): the real DINOv2 ViT backbone (get_intermediate_layers) is an
# external nn.Module and is not reproduced here; a deterministic stand-in
# produces the 4 intermediate (patch_tokens, cls_token) outputs.
# ---------------------------------------------------------------------------
def synthetic_backbone_intermediates(x, params, patch_size, n_layers=4):
    B, C, H, W = x.shape
    P = patch_size
    nH, nW = H // P, W // P
    # NCHW -> patches [B, N, P*P*C]
    patches = x.reshape(B, C, nH, P, nW, P).transpose(0, 2, 4, 3, 5, 1)
    patches = patches.reshape(B, nH * nW, P * P * C)

    tokens = jnp.dot(patches, params["patch_embed"])          # [B, N, D]
    cls = jnp.broadcast_to(params["cls_token"], (B, 1, tokens.shape[-1]))
    tokens = jnp.concatenate([cls, tokens], axis=1)            # [B, 1+N, D]

    outs = []
    for i in range(n_layers):
        tokens = jnp.tanh(jnp.dot(tokens, params["blocks"][i]))
        outs.append((tokens[:, 1:, :], tokens[:, 0, :]))       # (patch, cls)
    return outs


if __name__ == "__main__":
    key = jax.random.PRNGKey(0)
    ks = jax.random.split(key, 8)

    # small shapes consistent with the module's forward
    B, C, H, W = 2, 4, 16, 16
    P = 8                       # patch size -> N = 4 patch tokens
    D = 32                      # embed dim
    K = 16                      # num classes
    n_layers = 4

    x = jax.random.normal(ks[0], (B, C, H, W), dtype=jnp.float32)

    backbone_params = {
        "patch_embed": 0.05 * jax.random.normal(ks[1], (P * P * C, D), jnp.float32),
        "cls_token": 0.05 * jax.random.normal(ks[2], (1, 1, D), jnp.float32),
        "blocks": [0.2 * jax.random.normal(ks[3 + i], (D, D), jnp.float32)
                   for i in range(n_layers)],
    }

    # linear head: PyTorch nn.Linear(5*D, K): weight [K, 5D], bias [K]
    w = 0.05 * jax.random.normal(ks[7], (K, 5 * D), dtype=jnp.float32)
    b = 0.01 * jnp.arange(K, dtype=jnp.float32)

    # backbone (synthetic stand-in, plain JAX)
    inter = synthetic_backbone_intermediates(x, backbone_params, P, n_layers)
    cls_tokens = [inter[i][1] for i in range(4)]   # x[i][1]
    patch_last = inter[3][0]                       # x[3][0]

    # Pallas hot path: token reduction + concat + linear head
    out = linear_classifier_head(cls_tokens, patch_last, w, b)
    out = jax.block_until_ready(out)

    # pure-JAX f32 reference of the wrapper forward (layers == 4 branch)
    lin_in = jnp.concatenate(
        [cls_tokens[0], cls_tokens[1], cls_tokens[2], cls_tokens[3],
         patch_last.mean(axis=1)], axis=1)
    ref = lin_in @ w.T + b

    assert out.shape == (B, K)
    # bf16 operand rounding in the kernel -> compare at bf16-level tolerance
    assert jnp.allclose(out, ref, atol=2e-2, rtol=2e-2), \
        float(jnp.max(jnp.abs(out - ref)))
    print("KERNEL_OK")
</pallas_src>

<mosaic_0001>
module attributes {stable_mosaic.version = 11 : i64} {
  func.func @_head_kernel(%arg0: i32, %arg1: i32, %arg2: memref<16x128xbf16, #tpu.memory_space<vmem>>, %arg3: memref<16x16x32xf32, #tpu.memory_space<vmem>>, %arg4: memref<128x128xbf16, #tpu.memory_space<vmem>>, %arg5: memref<32x128xbf16, #tpu.memory_space<vmem>>, %arg6: memref<1x128xf32, #tpu.memory_space<vmem>>, %arg7: memref<16x128xf32, #tpu.memory_space<vmem>>, %arg8: memref<16x32xf32, #tpu.memory_space<vmem>>) attributes {dimension_semantics = [#tpu.dimension_semantics<parallel>, #tpu.dimension_semantics<arbitrary>], iteration_bounds = array<i64: 1, 1>, scalar_prefetch = 0 : i64, scratch_operands = 1 : i64, tpu.core_type = #tpu.core_type<tc>, window_params = [{transform_indices = @transform_0, window_bounds = array<i64: 16, 128>}, {transform_indices = @transform_1, window_bounds = array<i64: 16, 16, 32>}, {pipeline_mode = #tpu.pipeline_mode<synchronous>, transform_indices = @transform_2, window_bounds = array<i64: 128, 128>}, {pipeline_mode = #tpu.pipeline_mode<synchronous>, transform_indices = @transform_3, window_bounds = array<i64: 32, 128>}, {pipeline_mode = #tpu.pipeline_mode<synchronous>, transform_indices = @transform_4, window_bounds = array<i64: 1, 128>}, {transform_indices = @transform_5, window_bounds = array<i64: 16, 128>}]} {
    %c0_i32 = arith.constant 0 : i32
    %0 = arith.cmpi eq, %arg1, %c0_i32 : i32
    %1 = arith.extui %0 : i1 to i32
    %c0_i32_0 = arith.constant 0 : i32
    %2 = arith.cmpi ne, %1, %c0_i32_0 : i32
    scf.if %2 {
      %cst_10 = arith.constant 0.000000e+00 : f32
      %21 = vector.broadcast %cst_10 : f32 to vector<16x32xf32>
      %c0_11 = arith.constant 0 : index
      %c0_12 = arith.constant 0 : index
      %22 = vector.load %arg8[%c0_11, %c0_12] : memref<16x32xf32, #tpu.memory_space<vmem>>, vector<16x32xf32>
      tpu.vector_store %arg8[%c0_11, %c0_12], %21 {strides = array<i32>} : memref<16x32xf32, #tpu.memory_space<vmem>>, vector<16x32xf32>,
    } else {
    }
    %c0 = arith.constant 0 : index
    %c0_1 = arith.constant 0 : index
    %c0_2 = arith.constant 0 : index
    %3 = vector.load %arg3[%c0, %c0_1, %c0_2] : memref<16x16x32xf32, #tpu.memory_space<vmem>>, vector<16x16x32xf32>
    %4 = tpu.iota {dimensions = array<i32: 1>} : vector<1x16x1xi32>
    %c16_i32 = arith.constant 16 : i32
    %5 = arith.muli %arg1, %c16_i32 : i32
    %6 = vector.broadcast %5 : i32 to vector<1x16x1xi32>
    %7 = arith.addi %4, %6 : vector<1x16x1xi32>
    %c4_i32 = arith.constant 4 : i32
    %8 = vector.broadcast %c4_i32 : i32 to vector<1x16x1xi32>
    %9 = arith.cmpi slt, %7, %8 : vector<1x16x1xi32>
    %cst = arith.constant 0.000000e+00 : f32
    %10 = vector.broadcast %cst : f32 to vector<16x16x32xf32>
    %11 = vector.shape_cast %9 : vector<1x16x1xi1> to vector<1x16x1xi1>
    %12 = vector.broadcast %11 : vector<1x16x1xi1> to vector<16x16x32xi1>
    %13 = arith.select %12, %3, %10 : vector<16x16x32xi1>, vector<16x16x32xf32>
    %c0_3 = arith.constant 0 : index
    %c0_4 = arith.constant 0 : index
    %14 = vector.load %arg8[%c0_3, %c0_4] : memref<16x32xf32, #tpu.memory_space<vmem>>, vector<16x32xf32>
    %cst_5 = arith.constant dense<0.000000e+00> : vector<16x32xf32>
    %15 = vector.multi_reduction <add>, %13, %cst_5 [1] : vector<16x16x32xf32> to vector<16x32xf32>
    %16 = arith.addf %14, %15 : vector<16x32xf32>
    %c0_6 = arith.constant 0 : index
    %c0_7 = arith.constant 0 : index
    %17 = vector.load %arg8[%c0_6, %c0_7] : memref<16x32xf32, #tpu.memory_space<vmem>>, vector<16x32xf32>
    tpu.vector_store %arg8[%c0_6, %c0_7], %16 {strides = array<i32>} : memref<16x32xf32, #tpu.memory_space<vmem>>, vector<16x32xf32>,
    %c0_i32_8 = arith.constant 0 : i32
    %18 = arith.cmpi eq, %arg1, %c0_i32_8 : i32
    %19 = arith.extui %18 : i1 to i32
    %c0_i32_9 = arith.constant 0 : i32
    %20 = arith.cmpi ne, %19, %c0_i32_9 : i32
    scf.if %20 {
      %c0_10 = arith.constant 0 : index
      %c0_11 = arith.constant 0 : index
      %21 = vector.load %arg2[%c0_10, %c0_11] : memref<16x128xbf16, #tpu.memory_space<vmem>>, vector<16x128xbf16>
      %c0_12 = arith.constant 0 : index
      %c0_13 = arith.constant 0 : index
      %22 = vector.load %arg4[%c0_12, %c0_13] : memref<128x128xbf16, #tpu.memory_space<vmem>>, vector<128x128xbf16>
      %cst_14 = arith.constant dense<0.000000e+00> : vector<16x128xf32>
      %23 = tpu.matmul %21, %22, %cst_14 {dimension_numbers = #tpu.dot_dimension_numbers<[1], [0], [0], [1], [0, 0, 1, 1], [], []>} : vector<16x128xbf16>, vector<128x128xbf16>, vector<16x128xf32> -> vector<16x128xf32>
      %c0_15 = arith.constant 0 : index
      %c0_16 = arith.constant 0 : index
      %24 = vector.load %arg6[%c0_15, %c0_16] : memref<1x128xf32, #tpu.memory_space<vmem>>, vector<1x128xf32>
      %25 = vector.broadcast %24 : vector<1x128xf32> to vector<16x128xf32>
      %26 = arith.addf %23, %25 : vector<16x128xf32>
      %c0_17 = arith.constant 0 : index
      %c0_18 = arith.constant 0 : index
      %27 = vector.load %arg8[%c0_17, %c0_18] : memref<16x32xf32, #tpu.memory_space<vmem>>, vector<16x32xf32>
      %28 = arith.truncf %27 : vector<16x32xf32> to vector<16x32xbf16>
      %c0_19 = arith.constant 0 : index
      %c0_20 = arith.constant 0 : index
      %29 = vector.load %arg5[%c0_19, %c0_20] : memref<32x128xbf16, #tpu.memory_space<vmem>>, vector<32x128xbf16>
      %cst_21 = arith.constant dense<0.000000e+00> : vector<16x128xf32>
      %30 = tpu.matmul %28, %29, %cst_21 {dimension_numbers = #tpu.dot_dimension_numbers<[1], [0], [0], [1], [0, 0, 1, 1], [], []>} : vector<16x32xbf16>, vector<32x128xbf16>, vector<16x128xf32> -> vector<16x128xf32>
      %31 = arith.addf %26, %30 : vector<16x128xf32>
      %c0_22 = arith.constant 0 : index
      %c0_23 = arith.constant 0 : index
      %32 = vector.load %arg7[%c0_22, %c0_23] : memref<16x128xf32, #tpu.memory_space<vmem>>, vector<16x128xf32>
      tpu.vector_store %arg7[%c0_22, %c0_23], %31 {strides = array<i32>} : memref<16x128xf32, #tpu.memory_space<vmem>>, vector<16x128xf32>,
    } else {
    }
    return
  }
  func.func @transform_0(%arg0: i32, %arg1: i32) -> (i32, i32) {
    %c0_i32 = arith.constant 0 : i32
    %c0_i32_0 = arith.constant 0 : i32
    return %arg0, %c0_i32 : i32, i32
  }
  func.func @transform_1(%arg0: i32, %arg1: i32) -> (i32, i32, i32) {
    %c0_i32 = arith.constant 0 : i32
    %c0_i32_0 = arith.constant 0 : i32
    return %arg0, %arg1, %c0_i32 : i32, i32, i32
  }
  func.func @transform_2(%arg0: i32, %arg1: i32) -> (i32, i32) {
    %c0_i32 = arith.constant 0 : i32
    %c0_i32_0 = arith.constant 0 : i32
    %c0_i32_1 = arith.constant 0 : i32
    return %c0_i32, %c0_i32_0 : i32, i32
  }
  func.func @transform_3(%arg0: i32, %arg1: i32) -> (i32, i32) {
    %c0_i32 = arith.constant 0 : i32
    %c0_i32_0 = arith.constant 0 : i32
    %c0_i32_1 = arith.constant 0 : i32
    return %c0_i32, %c0_i32_0 : i32, i32
  }
  func.func @transform_4(%arg0: i32, %arg1: i32) -> (i32, i32) {
    %c0_i32 = arith.constant 0 : i32
    %c0_i32_0 = arith.constant 0 : i32
    %c0_i32_1 = arith.constant 0 : i32
    return %c0_i32, %c0_i32_0 : i32, i32
  }
  func.func @transform_5(%arg0: i32, %arg1: i32) -> (i32, i32) {
    %c0_i32 = arith.constant 0 : i32
    %c0_i32_0 = arith.constant 0 : i32
    return %arg0, %c0_i32 : i32, i32
  }
}

module attributes {stable_mosaic.version = 11 : i64} {
  func.func @_head_kernel(%arg0: i32, %arg1: i32, %arg2: memref<16x128xbf16, #tpu.memory_space<vmem>>, %arg3: memref<16x16x32xf32, #tpu.memory_space<vmem>>, %arg4: memref<128x128xbf16, #tpu.memory_space<vmem>>, %arg5: memref<32x128xbf16, #tpu.memory_space<vmem>>, %arg6: memref<1x128xf32, #tpu.memory_space<vmem>>, %arg7: memref<16x128xf32, #tpu.memory_space<vmem>>, %arg8: memref<16x32xf32, #tpu.memory_space<vmem>>) attributes {dimension_semantics = [#tpu.dimension_semantics<parallel>, #tpu.dimension_semantics<arbitrary>], iteration_bounds = array<i64: 1, 1>, scalar_prefetch = 0 : i64, scratch_operands = 1 : i64, tpu.core_type = #tpu.core_type<tc>, window_params = [{transform_indices = @transform_0, window_bounds = array<i64: 16, 128>}, {transform_indices = @transform_1, window_bounds = array<i64: 16, 16, 32>}, {pipeline_mode = #tpu.pipeline_mode<synchronous>, transform_indices = @transform_2, window_bounds = array<i64: 128, 128>}, {pipeline_mode = #tpu.pipeline_mode<synchronous>, transform_indices = @transform_3, window_bounds = array<i64: 32, 128>}, {pipeline_mode = #tpu.pipeline_mode<synchronous>, transform_indices = @transform_4, window_bounds = array<i64: 1, 128>}, {transform_indices = @transform_5, window_bounds = array<i64: 16, 128>}]} {
    %c0_i32 = arith.constant 0 : i32
    %0 = arith.cmpi eq, %arg1, %c0_i32 : i32
    %1 = arith.extui %0 : i1 to i32
    %c0_i32_0 = arith.constant 0 : i32
    %2 = arith.cmpi ne, %1, %c0_i32_0 : i32
    scf.if %2 {
      %cst_10 = arith.constant 0.000000e+00 : f32
      %21 = vector.broadcast %cst_10 : f32 to vector<16x32xf32>
      %c0_11 = arith.constant 0 : index
      %c0_12 = arith.constant 0 : index
      %22 = vector.load %arg8[%c0_11, %c0_12] : memref<16x32xf32, #tpu.memory_space<vmem>>, vector<16x32xf32>
      tpu.vector_store %arg8[%c0_11, %c0_12], %21 {strides = array<i32>} : memref<16x32xf32, #tpu.memory_space<vmem>>, vector<16x32xf32>,
    } else {
    }
    %c0 = arith.constant 0 : index
    %c0_1 = arith.constant 0 : index
    %c0_2 = arith.constant 0 : index
    %3 = vector.load %arg3[%c0, %c0_1, %c0_2] : memref<16x16x32xf32, #tpu.memory_space<vmem>>, vector<16x16x32xf32>
    %4 = tpu.iota {dimensions = array<i32: 1>} : vector<1x16x1xi32>
    %c16_i32 = arith.constant 16 : i32
    %5 = arith.muli %arg1, %c16_i32 : i32
    %6 = vector.broadcast %5 : i32 to vector<1x16x1xi32>
    %7 = arith.addi %4, %6 : vector<1x16x1xi32>
    %c4_i32 = arith.constant 4 : i32
    %8 = vector.broadcast %c4_i32 : i32 to vector<1x16x1xi32>
    %9 = arith.cmpi slt, %7, %8 : vector<1x16x1xi32>
    %cst = arith.constant 0.000000e+00 : f32
    %10 = vector.broadcast %cst : f32 to vector<16x16x32xf32>
    %11 = vector.shape_cast %9 : vector<1x16x1xi1> to vector<1x16x1xi1>
    %12 = vector.broadcast %11 : vector<1x16x1xi1> to vector<16x16x32xi1>
    %13 = arith.select %12, %3, %10 : vector<16x16x32xi1>, vector<16x16x32xf32>
    %c0_3 = arith.constant 0 : index
    %c0_4 = arith.constant 0 : index
    %14 = vector.load %arg8[%c0_3, %c0_4] : memref<16x32xf32, #tpu.memory_space<vmem>>, vector<16x32xf32>
    %cst_5 = arith.constant dense<0.000000e+00> : vector<16x32xf32>
    %15 = vector.multi_reduction <add>, %13, %cst_5 [1] : vector<16x16x32xf32> to vector<16x32xf32>
    %16 = arith.addf %14, %15 : vector<16x32xf32>
    %c0_6 = arith.constant 0 : index
    %c0_7 = arith.constant 0 : index
    %17 = vector.load %arg8[%c0_6, %c0_7] : memref<16x32xf32, #tpu.memory_space<vmem>>, vector<16x32xf32>
    tpu.vector_store %arg8[%c0_6, %c0_7], %16 {strides = array<i32>} : memref<16x32xf32, #tpu.memory_space<vmem>>, vector<16x32xf32>,
    %c0_i32_8 = arith.constant 0 : i32
    %18 = arith.cmpi eq, %arg1, %c0_i32_8 : i32
    %19 = arith.extui %18 : i1 to i32
    %c0_i32_9 = arith.constant 0 : i32
    %20 = arith.cmpi ne, %19, %c0_i32_9 : i32
    scf.if %20 {
      %c0_10 = arith.constant 0 : index
      %c0_11 = arith.constant 0 : index
      %21 = vector.load %arg2[%c0_10, %c0_11] : memref<16x128xbf16, #tpu.memory_space<vmem>>, vector<16x128xbf16>
      %c0_12 = arith.constant 0 : index
      %c0_13 = arith.constant 0 : index
      %22 = vector.load %arg4[%c0_12, %c0_13] : memref<128x128xbf16, #tpu.memory_space<vmem>>, vector<128x128xbf16>
      %cst_14 = arith.constant dense<0.000000e+00> : vector<16x128xf32>
      %23 = tpu.matmul %21, %22, %cst_14 {dimension_numbers = #tpu.dot_dimension_numbers<[1], [0], [0], [1], [0, 0, 1, 1], [], []>} : vector<16x128xbf16>, vector<128x128xbf16>, vector<16x128xf32> -> vector<16x128xf32>
      %c0_15 = arith.constant 0 : index
      %c0_16 = arith.constant 0 : index
      %24 = vector.load %arg6[%c0_15, %c0_16] : memref<1x128xf32, #tpu.memory_space<vmem>>, vector<1x128xf32>
      %25 = vector.broadcast %24 : vector<1x128xf32> to vector<16x128xf32>
      %26 = arith.addf %23, %25 : vector<16x128xf32>
      %c0_17 = arith.constant 0 : index
      %c0_18 = arith.constant 0 : index
      %27 = vector.load %arg8[%c0_17, %c0_18] : memref<16x32xf32, #tpu.memory_space<vmem>>, vector<16x32xf32>
      %28 = arith.truncf %27 : vector<16x32xf32> to vector<16x32xbf16>
      %c0_19 = arith.constant 0 : index
      %c0_20 = arith.constant 0 : index
      %29 = vector.load %arg5[%c0_19, %c0_20] : memref<32x128xbf16, #tpu.memory_space<vmem>>, vector<32x128xbf16>
      %cst_21 = arith.constant dense<0.000000e+00> : vector<16x128xf32>
      %30 = tpu.matmul %28, %29, %cst_21 {dimension_numbers = #tpu.dot_dimension_numbers<[1], [0], [0], [1], [0, 0, 1, 1], [], []>} : vector<16x32xbf16>, vector<32x128xbf16>, vector<16x128xf32> -> vector<16x128xf32>
      %31 = arith.addf %26, %30 : vector<16x128xf32>
      %c0_22 = arith.constant 0 : index
      %c0_23 = arith.constant 0 : index
      %32 = vector.load %arg7[%c0_22, %c0_23] : memref<16x128xf32, #tpu.memory_space<vmem>>, vector<16x128xf32>
      tpu.vector_store %arg7[%c0_22, %c0_23], %31 {strides = array<i32>} : memref<16x128xf32, #tpu.memory_space<vmem>>, vector<16x128xf32>,
    } else {
    }
    return
  }
  func.func @transform_0(%arg0: i32, %arg1: i32) -> (i32, i32) {
    %c0_i32 = arith.constant 0 : i32
    %c0_i32_0 = arith.constant 0 : i32
    return %arg0, %c0_i32 : i32, i32
  }
  func.func @transform_1(%arg0: i32, %arg1: i32) -> (i32, i32, i32) {
    %c0_i32 = arith.constant 0 : i32
    %c0_i32_0 = arith.constant 0 : i32
    return %arg0, %arg1, %c0_i32 : i32, i32, i32
  }
  func.func @transform_2(%arg0: i32, %arg1: i32) -> (i32, i32) {
    %c0_i32 = arith.constant 0 : i32
    %c0_i32_0 = arith.constant 0 : i32
    %c0_i32_1 = arith.constant 0 : i32
    return %c0_i32, %c0_i32_0 : i32, i32
  }
  func.func @transform_3(%arg0: i32, %arg1: i32) -> (i32, i32) {
    %c0_i32 = arith.constant 0 : i32
    %c0_i32_0 = arith.constant 0 : i32
    %c0_i32_1 = arith.constant 0 : i32
    return %c0_i32, %c0_i32_0 : i32, i32
  }
  func.func @transform_4(%arg0: i32, %arg1: i32) -> (i32, i32) {
    %c0_i32 = arith.constant 0 : i32
    %c0_i32_0 = arith.constant 0 : i32
    %c0_i32_1 = arith.constant 0 : i32
    return %c0_i32, %c0_i32_0 : i32, i32
  }
  func.func @transform_5(%arg0: i32, %arg1: i32) -> (i32, i32) {
    %c0_i32 = arith.constant 0 : i32
    %c0_i32_0 = arith.constant 0 : i32
    return %arg0, %c0_i32 : i32, i32
  }
}

</mosaic_0001>

<bundles_post_ra>
// kernel: tpu_custom_call.1
= control target key start
LH: loop header
LB: loop body
LE: loop exit
PB: predicated region body
PF: predicated region fallthrough
CT: control target
= control target key end

     0   :  { %10 = vsyncpa [#allocation4], 0  ;;  %s1014_s0 = inlined_call_operand.hbm [shape: bf16[2,128], index: 0, kind: input, shape index: {}]   ;;  %s1015_s1 = inlined_call_operand.hbm [shape: f32[2,4,32], index: 1, kind: input, shape index: {}]   ;;  %s1016_s2 = inlined_call_operand.hbm [shape: bf16[128,128], index: 2, kind: input, shape index: {}]   ;;  %s1017_s3 = inlined_call_operand.hbm [shape: bf16[32,128], index: 3, kind: input, shape index: {}]   ;;  %s1018_s4 = inlined_call_operand.vmem [shape: f32[1,128], index: 4, kind: input, shape index: {}]   ;;  %s1019_s5 = inlined_call_operand.hbm [shape: f32[2,128], index: 5, kind: output, shape index: {}]  }
   0x1   :  { %11 = vsyncpa [#allocation7], 0 }
   0x2   :  { %12 = vsyncpa [#allocation10], 0 }
   0x3   :  { %13 = vsyncpa [#allocation5], 0 }
   0x4   :  { %18 = vsyncadd [#allocation4], 112  ;;  %s815_s18 = smov [#allocation3]  }
   0x5   :  { %s19_s19 = sshll.u32 %s815_s18, 4  ;;  %s20_s19 = int_to_ptr.vmem [resolvable:$true] %s19_s19 }
   0x6   :  { %s735_s20 = scalar_lea.vmem %s20_s19, 16  ;;  %s739_s21 = scalar_lea.vmem %s20_s19, 128 }
   0x7   :  { %p736_p0 = scmp.ne.s32.totalorder %s20_s19, %s735_s20  ;;  %p740_p1 = scmp.lt.s32.totalorder %s20_s19, %s20_s19 }
   0x8   :  { %p741_p2 = scmp.lt.s32.totalorder %s739_s21, %s735_s20 }
   0xa   :  { %p742_p3 = por %p741_p2, %p740_p1 }
   0xc   :  { %p743_p4 = pnand %p742_p3, %p736_p0 }
   0xe   :  { %746 = shalt.err (!%p743_p4)
}
   0xf   :  { %s816_s22 = smov 16   ;;  %s817_s23 = smov 1  }
  0x10   :  { %25 = dma.hbm_to_vmem [thread:$0]  %s1014_s0, 16, %s20_s19, [#allocation4], %s816_s22, %s816_s22, %s817_s23  }
  0x11   :  { %30 = vsyncadd [#allocation7], 3968  ;;  %s35_s26 = sld [smem:[#allocation0]]   ;;  %s818_s27 = smov [#allocation6]  }
  0x12   :  { %s43_s28 = sshll.u32 %s818_s27, 4  ;;  %s819_s29 = smov 64   ;;  %s44_s28 = int_to_ptr.vmem [resolvable:$true] %s43_s28 }
  0x13   :  { %50 = sst [smem:[#allocation13]] %s819_s29  ;;  %s820_s30 = smov 256  }
  0x14   :  { %52 = sst [smem:[#allocation13 + $0x1]] %s820_s30  ;;  %s821_s6 = smov 1  }
  0x15   :  { %54 = sst [smem:[#allocation13 + $0x2]] %s821_s6  ;;  %s822_s9 = smov 4  }
  0x16   :  { %56 = sst [smem:[#allocation13 + $0x3]] %s819_s29  ;;  %s823_s10 = smov [#allocation7]  }
  0x17   :  { %s643_s7 = sshll.u32 %s35_s26, 26  ;;  %58 = sst [smem:[#allocation13 + $0x4]] %s819_s29 }
  0x18   :  { %s644_s8 = sadd.s32 134217728, %s643_s7  ;;  %60 = sst [smem:[#allocation13 + $0x5]] %s822_s9 }
  0x19   :  { %s824_s11 = smov 131072   ;;  %s825_s13 = smov [#allocation8]  }
  0x1a   :  { %62 = dma.general %s1015_s1, 128, %s44_s28, %s823_s10, %s824_s11, [#allocation13], %s644_s8, 0  }
  0x1b   :  { %s68_s14 = sshll.u32 %s825_s13, 4  ;;  %s69_s14 = int_to_ptr.vmem [resolvable:$true] %s68_s14 }
  0x1c   :  { %s755_s15 = scalar_lea.vmem %s69_s14, 1024  ;;  %p760_p6 = scmp.lt.s32.totalorder %s69_s14, %s69_s14 }
  0x1d   :  { %p756_p5 = scmp.ne.s32.totalorder %s69_s14, %s755_s15  ;;  %p761_p7 = scmp.lt.s32.totalorder %s755_s15, %s755_s15 }
  0x1f   :  { %p762_p8 = por %p761_p7, %p760_p6 }
  0x21   :  { %p763_p9 = pnand %p762_p8, %p756_p5 }
  0x23   :  { %766 = shalt.err (!%p763_p9)
}
  0x24   :  { %s826_s16 = smov 64   ;;  %s827_s17 = smov 4  }
  0x25   :  { %74 = dma.hbm_to_vmem [thread:$0]  %s1016_s2, 1024, %s69_s14, [#allocation7], %s826_s16, %s826_s16, %s827_s17  }
  0x26   :  { %s828_s20 = smov [#allocation9]  }
  0x27   :  { %s80_s21 = sshll.u32 %s828_s20, 4  ;;  %s81_s21 = int_to_ptr.vmem [resolvable:$true] %s80_s21 }
  0x28   :  { %s775_s1 = scalar_lea.vmem %s81_s21, 256  ;;  %p780_p11 = scmp.lt.s32.totalorder %s81_s21, %s81_s21 }
  0x29   :  { %p776_p10 = scmp.ne.s32.totalorder %s81_s21, %s775_s1  ;;  %p781_p12 = scmp.lt.s32.totalorder %s775_s1, %s775_s1 }
  0x2b   :  { %p782_p13 = por %p781_p12, %p780_p11 }
  0x2d   :  { %p783_p0 = pnand %p782_p13, %p776_p10 }
  0x2f   :  { %786 = shalt.err (!%p783_p0)
}
  0x30   :  { %86 = dma.hbm_to_vmem [thread:$0]  %s1017_s3, 256, %s81_s21, [#allocation10], %s826_s16, %s826_s16, %s827_s17  }
  0x31   :  { %807 = dma.done.wait [#allocation4], 128  }
  0x32   :  { %808 = vsyncadd [#allocation4], 4294967168 }
  0x33   :  { %809 = dma.done.wait [#allocation7], 5120  }
  0x34   :  { %810 = vsyncadd [#allocation7], 4294962176 }
  0x35   :  { %811 = dma.done.wait [#allocation10], 256  }
  0x36   :  { %812 = vsyncadd [#allocation10], 4294967040  ;;  %v829_v0 = vmov 0.0   ;;  %vm106_vm0 = vcmask 261120   ;;  %vm830_vm1 = vmmov 0   ;;  %v717_v1 = vld [vmem:[#allocation8 + $0x38] sm:$0xff]   ;;  %v141_v2 = vlaneseq }
  0x37   :  { %669 = vmatprep.subr.bf16.mxu0 %v829_v0  ;;  %689 = vmatprep.subr.bf16.mxu1 %v829_v0  ;;  %107 = vst.msk [vmem:[#allocation2] sm:$0xff] %vm106_vm0, %v829_v0  ;;  %108 = vst.msk [vmem:[#allocation2 + $0x8] sm:$0xff] %vm106_vm0, %v829_v0  ;;  %v831_v3 = vmov 1966171168   ;;  %v718_v5 = vld [vmem:[#allocation8 + $0x30] sm:$0xff]   ;;  %v719_v8 = vld [vmem:[#allocation8 + $0x28] sm:$0xff]  }
  0x38   :  { %685 = vmatprep.mubr.msk.bf16.mxu0 %vm830_vm1, %v829_v0  ;;  %693 = vmatprep.mubr.msk.bf16.mxu1 %vm830_vm1, %v829_v0  ;;  %v423_v4 = vunpack.c.l.s4 %v831_v3  ;;  %v886_v6 = vshrl.u32 %v141_v2, 7  ;;  %v724_v9 = vld [vmem:[#allocation9 + $0x8] sm:$0xff]   ;;  %v720_v10 = vld [vmem:[#allocation8 + $0x20] sm:$0xff]   ;;  %v379_v13 = vld [vmem:[#allocation3] sm:$0x1]  ;;  %vm349_vm3 = vcmask 1041409  }
  0x39   :  { %670 = vmatpush3.bf16.msra.mxu0 %v717_v1  ;;  %690 = vmatpush3.bf16.msra.mxu1 %v724_v9  ;;  %v726_v11 = vld [vmem:[#allocation9] sm:$0xff]   ;;  %v380_v14 = vld [vmem:[#allocation3 + $0x1] sm:$0x1]  ;;  %v381_v15 = vld [vmem:[#allocation3 + $0x2] sm:$0x1]  ;;  %vm351_vm4 = vcmask 1042434  }
  0x3a   :  { %671 = vmatprep.subr.bf16.mxu0 %v829_v0  ;;  %v424_v7 = vunpack.c.0.s8 %v423_v4  ;;  %vm148_vm2 = vcmp.lt.s32.totalorder %v886_v6, 4  ;;  %691 = vmatprep.subr.bf16.mxu1 %v829_v0  ;;  %v382_v16 = vld [vmem:[#allocation3 + $0x3] sm:$0x1]  ;;  %v383_v17 = vld [vmem:[#allocation3 + $0x4] sm:$0x1]  ;;  %v418_v19 = vcombine.low %v379_v13, %v380_v14  ;;  %v109_v25 = vld [vmem:[#allocation6] sm:$0xff] }
  0x3b   :  { %v384_v18 = vld [vmem:[#allocation3 + $0x5] sm:$0x1]  ;;  %v385_v21 = vld [vmem:[#allocation3 + $0x6] sm:$0x1]  ;;  %v386_v22 = vld [vmem:[#allocation3 + $0x7] sm:$0x1]  ;;  %v419_v23 = vcombine.low %v381_v15, %v382_v16 }
  0x3c   :  { %v427_v12 = vsub.s32 %v424_v7, %v886_v6  ;;  %v721_v20 = vld [vmem:[#allocation8 + $0x18] sm:$0xff]   ;;  %v420_v24 = vcombine.low %v383_v17, %v384_v18  ;;  %v421_v26 = vcombine.low %v385_v21, %v386_v22  ;;  %v111_v28 = vld [vmem:[#allocation6 + $0x10] sm:$0xff]  ;;  %v113_v29 = vld [vmem:[#allocation6 + $0x20] sm:$0xff]  ;;  %v154_v36 = vsel %vm148_vm2, %v109_v25, 0.0 }
  0x3d   :  { %672 = vmatpush3.bf16.msra.mxu0 %v718_v5  ;;  %692 = vmatpush3.bf16.msra.mxu1 %v726_v11  ;;  %v115_v30 = vld [vmem:[#allocation6 + $0x30] sm:$0xff]  ;;  %v117_v33 = vld [vmem:[#allocation6 + $0x40] sm:$0xff]  ;;  %v156_v37 = vsel %vm148_vm2, %v111_v28, 0.0  ;;  %v158_v42 = vsel %vm148_vm2, %v113_v29, 0.0  ;;  %v189_v2 = vsel %vm106_vm0, %v154_v36, 0.0  ;;  %v723_v13 = vld [vmem:[#allocation8 + $0x8] sm:$0xff]  }
  0x3e   :  { %673 = vmatprep.subr.bf16.mxu0 %v829_v0  ;;  %v428_v27 = vrot.slane %v418_v19, %v427_v12  ;;  %v435_v31 = vrot.slane %v419_v23, %v427_v12  ;;  %v442_v32 = vrot.slane %v420_v24, %v427_v12  ;;  %v119_v34 = vld [vmem:[#allocation6 + $0x50] sm:$0xff]  ;;  %v121_v35 = vld [vmem:[#allocation6 + $0x60] sm:$0xff]  ;;  %v449_v38 = vrot.slane %v421_v26, %v427_v12 }
  0x3f   :  { %v123_v39 = vld [vmem:[#allocation6 + $0x70] sm:$0xff]  ;;  %v125_v40 = vld [vmem:[#allocation6 + $0x80] sm:$0xff]  ;;  %v160_v43 = vsel %vm148_vm2, %v115_v30, 0.0  ;;  %v162_v44 = vsel %vm148_vm2, %v117_v33, 0.0  ;;  %v164_v49 = vsel %vm148_vm2, %v119_v34, 0.0  ;;  %v166_v50 = vsel %vm148_vm2, %v121_v35, 0.0 }
  0x40   :  { %v127_v41 = vld [vmem:[#allocation6 + $0x90] sm:$0xff]  ;;  %v450_v45 = vcombine.low %v428_v27, %v435_v31  ;;  %v129_v46 = vld [vmem:[#allocation6 + $0xa0] sm:$0xff]  ;;  %v168_v51 = vsel %vm148_vm2, %v123_v39, 0.0  ;;  %v451_v52 = vcombine.low %v442_v32, %v449_v38  ;;  %v912_v55 = vsel %vm148_vm2, %v125_v40, 0.0 }
  0x41   :  { %674 = vmatpush3.bf16.msra.mxu0 %v719_v8  ;;  %v131_v47 = vld [vmem:[#allocation6 + $0xb0] sm:$0xff]  ;;  %v133_v48 = vld [vmem:[#allocation6 + $0xc0] sm:$0xff]  ;;  %v916_v56 = vsel %vm148_vm2, %v127_v41, 0.0  ;;  %v920_v57 = vsel %vm148_vm2, %v129_v46, 0.0  ;;  %v198_v3 = vsel %vm106_vm0, %v156_v37, 0.0  ;;  %v192_v4 = vrot.slane %v189_v2, 4 }
  0x42   :  { %675 = vmatprep.subr.bf16.mxu0 %v829_v0  ;;  %v135_v53 = vld [vmem:[#allocation6 + $0xd0] sm:$0xff]  ;;  %v137_v54 = vld [vmem:[#allocation6 + $0xe0] sm:$0xff]  ;;  %v922_v59 = vrot.slane %v450_v45, %v427_v12  ;;  %v926_v60 = vsel %vm148_vm2, %v131_v47, 0.0  ;;  %v930_v61 = vsel %vm148_vm2, %v133_v48, 0.0  ;;  %v937_v63 = vrot.slane %v451_v52, %v427_v12 }
  0x43   :  { %v722_v58 = vld [vmem:[#allocation8 + $0x10] sm:$0xff]   ;;  %v934_v62 = vsel %vm148_vm2, %v135_v53, 0.0  ;;  %v941_v1 = vsel %vm148_vm2, %v137_v54, 0.0  ;;  %v201_v5 = vrot.slane %v198_v3, 4  ;;  %v207_v7 = vsel %vm106_vm0, %v158_v42, 0.0  ;;  %v725_v30 = vld [vmem:[#allocation8] sm:$0xff]  }
  0x44   :  { %v216_v8 = vsel %vm106_vm0, %v160_v43, 0.0  ;;  %v466_v9 = vcombine.low %v922_v59, %v937_v63  ;;  %v225_v12 = vsel %vm106_vm0, %v162_v44, 0.0  ;;  %v193_v14 = vadd.f32 %v192_v4, %v189_v2  ;;  %v139_v35 = vld [vmem:[#allocation6 + $0xf0] sm:$0xff] }
  0x45   :  { %676 = vmatpush3.bf16.msra.mxu0 %v720_v10  ;;  %v210_v10 = vrot.slane %v207_v7, 4  ;;  %v219_v11 = vrot.slane %v216_v8, 4  ;;  %v202_v15 = vadd.f32 %v201_v5, %v198_v3  ;;  %v228_v16 = vrot.slane %v225_v12, 4 }
  0x46   :  { %677 = vmatprep.subr.bf16.mxu0 %v829_v0  ;;  %v234_v17 = vsel %vm106_vm0, %v164_v49, 0.0  ;;  %v243_v21 = vsel %vm106_vm0, %v166_v50, 0.0  ;;  %v194_v22 = vrot.slane %v193_v14, 2  ;;  %v252_v29 = vsel %vm106_vm0, %v168_v51, 0.0 }
  0x47   :  { %v211_v18 = vadd.f32 %v210_v10, %v207_v7  ;;  %v220_v19 = vadd.f32 %v219_v11, %v216_v8  ;;  %v203_v23 = vrot.slane %v202_v15, 2  ;;  %v229_v24 = vadd.f32 %v228_v16, %v225_v12 }
  0x48   :  { %v246_v25 = vrot.slane %v243_v21, 4  ;;  %v195_v31 = vadd.f32 %v194_v22, %v193_v14  ;;  %v255_v39 = vrot.slane %v252_v29, 4  ;;  %v184_v48 = vsel %vm148_vm2, %v139_v35, 0.0 }
  0x49   :  { %678 = vmatpush3.bf16.msra.mxu0 %v721_v20  ;;  %v237_v20 = vrot.slane %v234_v17, 4  ;;  %v212_v26 = vrot.slane %v211_v18, 2  ;;  %v221_v27 = vrot.slane %v220_v19, 2  ;;  %v204_v32 = vadd.f32 %v203_v23, %v202_v15 }
  0x4a   :  { %679 = vmatprep.subr.bf16.mxu0 %v829_v0  ;;  %v230_v33 = vrot.slane %v229_v24, 2  ;;  %v247_v34 = vadd.f32 %v246_v25, %v243_v21  ;;  %v196_v40 = vrot.slane %v195_v31, 1  ;;  %v256_v47 = vadd.f32 %v255_v39, %v252_v29 }
  0x4b   :  { %v238_v28 = vadd.f32 %v237_v20, %v234_v17  ;;  %v213_v36 = vadd.f32 %v212_v26, %v211_v18  ;;  %v222_v37 = vadd.f32 %v221_v27, %v220_v19  ;;  %v205_v41 = vrot.slane %v204_v32, 1 }
  0x4c   :  { %v231_v42 = vadd.f32 %v230_v33, %v229_v24  ;;  %v248_v43 = vrot.slane %v247_v34, 2  ;;  %v957_v49 = vadd.f32 %v196_v40, %v195_v31  ;;  %v257_v54 = vrot.slane %v256_v47, 2 }
  0x4d   :  { %680 = vmatpush3.bf16.msra.mxu0 %v722_v58  ;;  %v239_v38 = vrot.slane %v238_v28, 2  ;;  %v214_v44 = vrot.slane %v213_v36, 1  ;;  %v223_v45 = vrot.slane %v222_v37, 1  ;;  %v959_v51 = vadd.f32 %v205_v41, %v204_v32 }
  0x4e   :  { %681 = vmatprep.subr.bf16.mxu0 %v829_v0  ;;  %v249_v50 = vadd.f32 %v248_v43, %v247_v34  ;;  %v261_v63 = vsel %vm106_vm0, %v912_v55, 0.0  ;;  %v270_v6 = vsel %vm106_vm0, %v916_v56, 0.0  ;;  %v258_v3 = vadd.f32 %v257_v54, %v256_v47 }
  0x4f   :  { %v240_v46 = vadd.f32 %v239_v38, %v238_v28  ;;  %v961_v52 = vadd.f32 %v214_v44, %v213_v36  ;;  %v963_v58 = vadd.f32 %v223_v45, %v222_v37  ;;  %v264_v4 = vrot.slane %v261_v63, 4 }
  0x50   :  { %v250_v59 = vrot.slane %v249_v50, 1  ;;  %v273_v5 = vrot.slane %v270_v6, 4  ;;  %v279_v8 = vsel %vm106_vm0, %v920_v57, 0.0  ;;  %v288_v10 = vsel %vm106_vm0, %v926_v60, 0.0 }
  0x51   :  { %682 = vmatpush3.bf16.msra.mxu0 %v723_v13  ;;  %v241_v53 = vrot.slane %v240_v46, 1  ;;  %v297_v55 = vsel %vm106_vm0, %v930_v61, 0.0  ;;  %v265_v56 = vadd.f32 %v264_v4, %v261_v63  ;;  %v282_v12 = vrot.slane %v279_v8, 4 }
  0x52   :  { %683 = vmatprep.subr.bf16.mxu0 %v829_v0  ;;  %v232_v0 = vrot.slane %v231_v42, 1  ;;  %v979_v11 = vadd.f32 %v250_v59, %v249_v50  ;;  %v291_v13 = vrot.slane %v288_v10, 4  ;;  %v300_v14 = vrot.slane %v297_v55, 4 }
  0x53   :  { %v971_v7 = vadd.f32 %v241_v53, %v240_v46  ;;  %v306_v15 = vsel %vm106_vm0, %v934_v62, 0.0  ;;  %v315_v57 = vsel %vm106_vm0, %v941_v1, 0.0  ;;  %v259_v16 = vrot.slane %v258_v3, 1 }
  0x54   :  { %v969_v2 = vadd.f32 %v232_v0, %v231_v42  ;;  %v266_v60 = vrot.slane %v265_v56, 2  ;;  %v283_v18 = vadd.f32 %v282_v12, %v279_v8  ;;  %vm353_vm5 = vcmask 1043459  }
  0x55   :  { %684 = vmatpush3.bf16.msra.mxu0 %v725_v30  ;;  %v292_v61 = vadd.f32 %v291_v13, %v288_v10  ;;  %v301_v19 = vadd.f32 %v300_v14, %v297_v55  ;;  %v309_v20 = vrot.slane %v306_v15, 4  ;;  %v318_v21 = vrot.slane %v315_v57, 4  ;;  %v186_v55 = vld [vmem:[#allocation2] sm:$0xff] }
  0x56   :  { %vm355_vm6 = vcmask 1044484   ;;  %v267_v22 = vadd.f32 %v266_v60, %v265_v56  ;;  %v284_v24 = vrot.slane %v283_v18, 2  ;;  %v324_v25 = vsel %vm106_vm0, %v184_v48, 0.0 }
  0x57   :  { %vm357_vm7 = vcmask 1045509   ;;  %v293_v62 = vrot.slane %v292_v61, 2  ;;  %v302_v26 = vrot.slane %v301_v19, 2  ;;  %v310_v1 = vadd.f32 %v309_v20, %v306_v15 }
  0x58   :  { %686 = vmatmul.mubr.bf16.vlgmr.msra.gmra.mxu0 %v466_v9  ;;  %v274_v9 = vadd.f32 %v273_v5, %v270_v6  ;;  %v319_v27 = vadd.f32 %v318_v21, %v315_v57  ;;  %vm359_vm8 = vcmask 1046534   ;;  %v268_v28 = vrot.slane %v267_v22, 1 }
  0x59   :  { %v285_v30 = vadd.f32 %v284_v24, %v283_v18  ;;  %v327_v31 = vrot.slane %v324_v25, 4  ;;  %v294_v32 = vadd.f32 %v293_v62, %v292_v61  ;;  %v303_v33 = vadd.f32 %v302_v26, %v301_v19 }
  0x5a   :  { %v275_v17 = vrot.slane %v274_v9, 2  ;;  %v311_v34 = vrot.slane %v310_v1, 2  ;;  %v320_v35 = vrot.slane %v319_v27, 2  ;;  %v269_v36 = vadd.f32 %v268_v28, %v267_v22 }
  0x5b   :  { %v286_v38 = vrot.slane %v285_v30, 1  ;;  %v328_v39 = vadd.f32 %v327_v31, %v324_v25  ;;  %v295_v40 = vrot.slane %v294_v32, 1  ;;  %v304_v41 = vrot.slane %v303_v33, 1 }
  0x5c   :  { %v276_v23 = vadd.f32 %v275_v17, %v274_v9  ;;  %v312_v42 = vadd.f32 %v311_v34, %v310_v1  ;;  %v321_v43 = vadd.f32 %v320_v35, %v319_v27  ;;  %v350_v46 = vsel %vm349_vm3, %v959_v51, %v957_v49  ;;  %v187_v9 = vld [vmem:[#allocation2 + $0x8] sm:$0xff] }
  0x5d   :  { %v287_v44 = vadd.f32 %v286_v38, %v285_v30  ;;  %v329_v45 = vrot.slane %v328_v39, 2  ;;  %v296_v48 = vadd.f32 %v295_v40, %v294_v32  ;;  %v305_v0 = vadd.f32 %v304_v41, %v303_v33 }
  0x5e   :  { %v277_v29 = vrot.slane %v276_v23, 1  ;;  %v313_v50 = vrot.slane %v312_v42, 1  ;;  %v322_v53 = vrot.slane %v321_v43, 1  ;;  %v260_v54 = vadd.f32 %v259_v16, %v258_v3 }
  0x5f   :  { %v330_v59 = vadd.f32 %v329_v45, %v328_v39  ;;  %v352_v63 = vsel %vm351_vm4, %v961_v52, %v350_v46  ;;  %vm361_vm9 = vcmask 1047559  }
  0x60   :  { %v278_v37 = vadd.f32 %v277_v29, %v276_v23  ;;  %v314_v4 = vadd.f32 %v313_v50, %v312_v42  ;;  %v323_v5 = vadd.f32 %v322_v53, %v321_v43  ;;  %v354_v8 = vsel %vm353_vm5, %v963_v58, %v352_v63 }
  0x61   :  { %v331_v51 = vrot.slane %v330_v59, 1  ;;  %v356_v10 = vsel %vm355_vm6, %v969_v2, %v354_v8 }
  0x62   :  { %v363_v47 = vsel %vm349_vm3, %v278_v37, %v269_v36  ;;  %v358_v52 = vsel %vm357_vm7, %v971_v7, %v356_v10 }
  0x63   :  { %v364_v6 = vsel %vm351_vm4, %v287_v44, %v363_v47  ;;  %v332_v12 = vadd.f32 %v331_v51, %v330_v59  ;;  %v360_v58 = vsel %vm359_vm8, %v979_v11, %v358_v52  ;;  %v645_v11 = vld [vmem:[%s1018_s4] ss:$0 sm:$0xff] }
  0x64   :  { %v365_v49 = vsel %vm353_vm5, %v296_v48, %v364_v6  ;;  %v362_v14 = vsel %vm361_vm9, %v260_v54, %v360_v58 }
  0x65   :  { %v366_v3 = vsel %vm355_vm6, %v305_v0, %v365_v49  ;;  %v372_v57 = vadd.f32 %v362_v14, %v186_v55 }
  0x66   :  { %v367_v56 = vsel %vm357_vm7, %v314_v4, %v366_v3 }
  0x67   :  { %v368_v13 = vsel %vm359_vm8, %v323_v5, %v367_v56  ;;  %374 = vst.msk [vmem:[#allocation2] sm:$0xff] %vm106_vm0, %v372_v57 }
  0x68   :  { %v369_v15 = vsel %vm361_vm9, %v332_v12, %v368_v13 }
  0x69   :  { %v373_v2 = vadd.f32 %v369_v15, %v187_v9 }
  0x6b   :  { %375 = vst.msk [vmem:[#allocation2 + $0x8] sm:$0xff] %vm106_vm0, %v373_v2 }
  0x6e   :  { %v557_v16 = vld [vmem:[#allocation2] sm:$0xff] }
  0x72   :  { %v558_v60 = vld [vmem:[#allocation2 + $0x8] sm:$0xff] }
  0x73   :  { %v559_v7 = vpack.c.bf16 %v558_v60, %v557_v16 }
  0x75   :  { %694 = vmatmul.mubr.msk.bf16.vlgmr.msra.gmra.mxu1 %vm106_vm0, %v559_v7 }
 0x118   :  { %v550_v17 = vpop.f32.mrf.mxu0 }
 0x119   :  { %v551_v20 = vadd.f32 %v645_v11, %v550_v17 }
 0x11a   :  { %v687_v18 = vpop.f32.mrf.mxu0 }
 0x11c   :  { %v553_v61 = vpop.f32.mrf.mxu0 }
 0x11d   :  { %v554_v23 = vadd.f32 %v645_v11, %v553_v61 }
 0x11e   :  { %v688_v19 = vpop.f32.mrf.mxu0 }
 0x135   :  { %v613_v21 = vpop.f32.mrf.mxu1 }
 0x136   :  { %v620_v22 = vadd.f32 %v613_v21, %v551_v20 }
 0x137   :  { %v695_v24 = vpop.f32.mrf.mxu1 }
 0x138   :  { %622 = vst [vmem:[#allocation11] sm:$0xff] %v620_v22 }
 0x139   :  { %v616_v25 = vpop.f32.mrf.mxu1 }
 0x13a   :  { %v621_v62 = vadd.f32 %v616_v25, %v554_v23 }
 0x13b   :  { %v696_v26 = vpop.f32.mrf.mxu1 }
 0x13c   :  { %623 = vst [vmem:[#allocation11 + $0x8] sm:$0xff] %v621_v62 }
 0x13d   :  { %628 = vsyncadd [#allocation5], 224  ;;  %s832_s24 = smov [#allocation11]  }
 0x13e   :  { %s629_s25 = sshll.u32 %s832_s24, 4  ;;  %s630_s25 = int_to_ptr.vmem [resolvable:$true] %s629_s25 }
 0x13f   :  { %s787_s26 = scalar_lea.vmem %s630_s25, 32  ;;  %s791_s27 = scalar_lea.vmem %s630_s25, 256 }
 0x140   :  { %p788_p1 = scmp.ne.s32.totalorder %s630_s25, %s787_s26  ;;  %p792_p2 = scmp.lt.s32.totalorder %s630_s25, %s630_s25 }
 0x141   :  { %p793_p3 = scmp.lt.s32.totalorder %s791_s27, %s787_s26 }
 0x143   :  { %p794_p4 = por %p793_p3, %p792_p2 }
 0x145   :  { %p795_p5 = pnand %p794_p4, %p788_p1 }
 0x147   :  { %798 = shalt.err (!%p795_p5)
}
 0x148   :  { %s833_s4 = smov 32   ;;  %s834_s28 = smov 2  }
 0x149   :  { %635 = dma.vmem_to_hbm [thread:$0]  %s630_s25, 32, %s1019_s5, [#allocation5], %s833_s4, %s833_s4, %s834_s28  }
 0x14a   :  { %813 = dma.done.wait [#allocation5], 256  }
 0x14b   :  { %814 = vsyncadd [#allocation5], 4294967040 }
 0x14c   :  { %639 = vsyncpa [#allocation4], 1 }
 0x14d   :  { %640 = vsyncpa [#allocation7], 1 }
 0x14e   :  { %641 = vsyncpa [#allocation10], 1 }
 0x14f   :  { %642 = vsyncpa [#allocation5], 1 }

// kernel: tpu_custom_call.1
= control target key start
LH: loop header
LB: loop body
LE: loop exit
PB: predicated region body
PF: predicated region fallthrough
CT: control target
= control target key end

     0   :  { %10 = vsyncpa [#allocation4], 0  ;;  %s1014_s0 = inlined_call_operand.hbm [shape: bf16[2,128], index: 0, kind: input, shape index: {}]   ;;  %s1015_s1 = inlined_call_operand.hbm [shape: f32[2,4,32], index: 1, kind: input, shape index: {}]   ;;  %s1016_s2 = inlined_call_operand.hbm [shape: bf16[128,128], index: 2, kind: input, shape index: {}]   ;;  %s1017_s3 = inlined_call_operand.hbm [shape: bf16[32,128], index: 3, kind: input, shape index: {}]   ;;  %s1018_s4 = inlined_call_operand.vmem [shape: f32[1,128], index: 4, kind: input, shape index: {}]   ;;  %s1019_s5 = inlined_call_operand.hbm [shape: f32[2,128], index: 5, kind: output, shape index: {}]  }
   0x1   :  { %11 = vsyncpa [#allocation7], 0 }
   0x2   :  { %12 = vsyncpa [#allocation10], 0 }
   0x3   :  { %13 = vsyncpa [#allocation5], 0 }
   0x4   :  { %18 = vsyncadd [#allocation4], 112  ;;  %s815_s18 = smov [#allocation3]  }
   0x5   :  { %s19_s19 = sshll.u32 %s815_s18, 4  ;;  %s20_s19 = int_to_ptr.vmem [resolvable:$true] %s19_s19 }
   0x6   :  { %s735_s20 = scalar_lea.vmem %s20_s19, 16  ;;  %s739_s21 = scalar_lea.vmem %s20_s19, 128 }
   0x7   :  { %p736_p0 = scmp.ne.s32.totalorder %s20_s19, %s735_s20  ;;  %p740_p1 = scmp.lt.s32.totalorder %s20_s19, %s20_s19 }
   0x8   :  { %p741_p2 = scmp.lt.s32.totalorder %s739_s21, %s735_s20 }
   0xa   :  { %p742_p3 = por %p741_p2, %p740_p1 }
   0xc   :  { %p743_p4 = pnand %p742_p3, %p736_p0 }
   0xe   :  { %746 = shalt.err (!%p743_p4)
}
   0xf   :  { %s816_s22 = smov 16   ;;  %s817_s23 = smov 1  }
  0x10   :  { %25 = dma.hbm_to_vmem [thread:$0]  %s1014_s0, 16, %s20_s19, [#allocation4], %s816_s22, %s816_s22, %s817_s23  }
  0x11   :  { %30 = vsyncadd [#allocation7], 3968  ;;  %s35_s26 = sld [smem:[#allocation0]]   ;;  %s818_s27 = smov [#allocation6]  }
  0x12   :  { %s43_s28 = sshll.u32 %s818_s27, 4  ;;  %s819_s29 = smov 64   ;;  %s44_s28 = int_to_ptr.vmem [resolvable:$true] %s43_s28 }
  0x13   :  { %50 = sst [smem:[#allocation13]] %s819_s29  ;;  %s820_s30 = smov 256  }
  0x14   :  { %52 = sst [smem:[#allocation13 + $0x1]] %s820_s30  ;;  %s821_s6 = smov 1  }
  0x15   :  { %54 = sst [smem:[#allocation13 + $0x2]] %s821_s6  ;;  %s822_s9 = smov 4  }
  0x16   :  { %56 = sst [smem:[#allocation13 + $0x3]] %s819_s29  ;;  %s823_s10 = smov [#allocation7]  }
  0x17   :  { %s643_s7 = sshll.u32 %s35_s26, 26  ;;  %58 = sst [smem:[#allocation13 + $0x4]] %s819_s29 }
  0x18   :  { %s644_s8 = sadd.s32 134217728, %s643_s7  ;;  %60 = sst [smem:[#allocation13 + $0x5]] %s822_s9 }
  0x19   :  { %s824_s11 = smov 131072   ;;  %s825_s13 = smov [#allocation8]  }
  0x1a   :  { %62 = dma.general %s1015_s1, 128, %s44_s28, %s823_s10, %s824_s11, [#allocation13], %s644_s8, 0  }
  0x1b   :  { %s68_s14 = sshll.u32 %s825_s13, 4  ;;  %s69_s14 = int_to_ptr.vmem [resolvable:$true] %s68_s14 }
  0x1c   :  { %s755_s15 = scalar_lea.vmem %s69_s14, 1024  ;;  %p760_p6 = scmp.lt.s32.totalorder %s69_s14, %s69_s14 }
  0x1d   :  { %p756_p5 = scmp.ne.s32.totalorder %s69_s14, %s755_s15  ;;  %p761_p7 = scmp.lt.s32.totalorder %s755_s15, %s755_s15 }
  0x1f   :  { %p762_p8 = por %p761_p7, %p760_p6 }
  0x21   :  { %p763_p9 = pnand %p762_p8, %p756_p5 }
  0x23   :  { %766 = shalt.err (!%p763_p9)
}
  0x24   :  { %s826_s16 = smov 64   ;;  %s827_s17 = smov 4  }
  0x25   :  { %74 = dma.hbm_to_vmem [thread:$0]  %s1016_s2, 1024, %s69_s14, [#allocation7], %s826_s16, %s826_s16, %s827_s17  }
  0x26   :  { %s828_s20 = smov [#allocation9]  }
  0x27   :  { %s80_s21 = sshll.u32 %s828_s20, 4  ;;  %s81_s21 = int_to_ptr.vmem [resolvable:$true] %s80_s21 }
  0x28   :  { %s775_s1 = scalar_lea.vmem %s81_s21, 256  ;;  %p780_p11 = scmp.lt.s32.totalorder %s81_s21, %s81_s21 }
  0x29   :  { %p776_p10 = scmp.ne.s32.totalorder %s81_s21, %s775_s1  ;;  %p781_p12 = scmp.lt.s32.totalorder %s775_s1, %s775_s1 }
  0x2b   :  { %p782_p13 = por %p781_p12, %p780_p11 }
  0x2d   :  { %p783_p0 = pnand %p782_p13, %p776_p10 }
  0x2f   :  { %786 = shalt.err (!%p783_p0)
}
  0x30   :  { %86 = dma.hbm_to_vmem [thread:$0]  %s1017_s3, 256, %s81_s21, [#allocation10], %s826_s16, %s826_s16, %s827_s17  }
  0x31   :  { %807 = dma.done.wait [#allocation4], 128  }
  0x32   :  { %808 = vsyncadd [#allocation4], 4294967168 }
  0x33   :  { %809 = dma.done.wait [#allocation7], 5120  }
  0x34   :  { %810 = vsyncadd [#allocation7], 4294962176 }
  0x35   :  { %811 = dma.done.wait [#allocation10], 256  }
  0x36   :  { %812 = vsyncadd [#allocation10], 4294967040  ;;  %v829_v0 = vmov 0.0   ;;  %vm106_vm0 = vcmask 261120   ;;  %vm830_vm1 = vmmov 0   ;;  %v717_v1 = vld [vmem:[#allocation8 + $0x38] sm:$0xff]   ;;  %v141_v2 = vlaneseq }
  0x37   :  { %669 = vmatprep.subr.bf16.mxu0 %v829_v0  ;;  %689 = vmatprep.subr.bf16.mxu1 %v829_v0  ;;  %107 = vst.msk [vmem:[#allocation2] sm:$0xff] %vm106_vm0, %v829_v0  ;;  %108 = vst.msk [vmem:[#allocation2 + $0x8] sm:$0xff] %vm106_vm0, %v829_v0  ;;  %v831_v3 = vmov 1966171168   ;;  %v718_v5 = vld [vmem:[#allocation8 + $0x30] sm:$0xff]   ;;  %v719_v8 = vld [vmem:[#allocation8 + $0x28] sm:$0xff]  }
  0x38   :  { %685 = vmatprep.mubr.msk.bf16.mxu0 %vm830_vm1, %v829_v0  ;;  %693 = vmatprep.mubr.msk.bf16.mxu1 %vm830_vm1, %v829_v0  ;;  %v423_v4 = vunpack.c.l.s4 %v831_v3  ;;  %v886_v6 = vshrl.u32 %v141_v2, 7  ;;  %v724_v9 = vld [vmem:[#allocation9 + $0x8] sm:$0xff]   ;;  %v720_v10 = vld [vmem:[#allocation8 + $0x20] sm:$0xff]   ;;  %v379_v13 = vld [vmem:[#allocation3] sm:$0x1]  ;;  %vm349_vm3 = vcmask 1041409  }
  0x39   :  { %670 = vmatpush3.bf16.msra.mxu0 %v717_v1  ;;  %690 = vmatpush3.bf16.msra.mxu1 %v724_v9  ;;  %v726_v11 = vld [vmem:[#allocation9] sm:$0xff]   ;;  %v380_v14 = vld [vmem:[#allocation3 + $0x1] sm:$0x1]  ;;  %v381_v15 = vld [vmem:[#allocation3 + $0x2] sm:$0x1]  ;;  %vm351_vm4 = vcmask 1042434  }
  0x3a   :  { %671 = vmatprep.subr.bf16.mxu0 %v829_v0  ;;  %v424_v7 = vunpack.c.0.s8 %v423_v4  ;;  %vm148_vm2 = vcmp.lt.s32.totalorder %v886_v6, 4  ;;  %691 = vmatprep.subr.bf16.mxu1 %v829_v0  ;;  %v382_v16 = vld [vmem:[#allocation3 + $0x3] sm:$0x1]  ;;  %v383_v17 = vld [vmem:[#allocation3 + $0x4] sm:$0x1]  ;;  %v418_v19 = vcombine.low %v379_v13, %v380_v14  ;;  %v109_v25 = vld [vmem:[#allocation6] sm:$0xff] }
  0x3b   :  { %v384_v18 = vld [vmem:[#allocation3 + $0x5] sm:$0x1]  ;;  %v385_v21 = vld [vmem:[#allocation3 + $0x6] sm:$0x1]  ;;  %v386_v22 = vld [vmem:[#allocation3 + $0x7] sm:$0x1]  ;;  %v419_v23 = vcombine.low %v381_v15, %v382_v16 }
  0x3c   :  { %v427_v12 = vsub.s32 %v424_v7, %v886_v6  ;;  %v721_v20 = vld [vmem:[#allocation8 + $0x18] sm:$0xff]   ;;  %v420_v24 = vcombine.low %v383_v17, %v384_v18  ;;  %v421_v26 = vcombine.low %v385_v21, %v386_v22  ;;  %v111_v28 = vld [vmem:[#allocation6 + $0x10] sm:$0xff]  ;;  %v113_v29 = vld [vmem:[#allocation6 + $0x20] sm:$0xff]  ;;  %v154_v36 = vsel %vm148_vm2, %v109_v25, 0.0 }
  0x3d   :  { %672 = vmatpush3.bf16.msra.mxu0 %v718_v5  ;;  %692 = vmatpush3.bf16.msra.mxu1 %v726_v11  ;;  %v115_v30 = vld [vmem:[#allocation6 + $0x30] sm:$0xff]  ;;  %v117_v33 = vld [vmem:[#allocation6 + $0x40] sm:$0xff]  ;;  %v156_v37 = vsel %vm148_vm2, %v111_v28, 0.0  ;;  %v158_v42 = vsel %vm148_vm2, %v113_v29, 0.0  ;;  %v189_v2 = vsel %vm106_vm0, %v154_v36, 0.0  ;;  %v723_v13 = vld [vmem:[#allocation8 + $0x8] sm:$0xff]  }
  0x3e   :  { %673 = vmatprep.subr.bf16.mxu0 %v829_v0  ;;  %v428_v27 = vrot.slane %v418_v19, %v427_v12  ;;  %v435_v31 = vrot.slane %v419_v23, %v427_v12  ;;  %v442_v32 = vrot.slane %v420_v24, %v427_v12  ;;  %v119_v34 = vld [vmem:[#allocation6 + $0x50] sm:$0xff]  ;;  %v121_v35 = vld [vmem:[#allocation6 + $0x60] sm:$0xff]  ;;  %v449_v38 = vrot.slane %v421_v26, %v427_v12 }
  0x3f   :  { %v123_v39 = vld [vmem:[#allocation6 + $0x70] sm:$0xff]  ;;  %v125_v40 = vld [vmem:[#allocation6 + $0x80] sm:$0xff]  ;;  %v160_v43 = vsel %vm148_vm2, %v115_v30, 0.0  ;;  %v162_v44 = vsel %vm148_vm2, %v117_v33, 0.0  ;;  %v164_v49 = vsel %vm148_vm2, %v119_v34, 0.0  ;;  %v166_v50 = vsel %vm148_vm2, %v121_v35, 0.0 }
  0x40   :  { %v127_v41 = vld [vmem:[#allocation6 + $0x90] sm:$0xff]  ;;  %v450_v45 = vcombine.low %v428_v27, %v435_v31  ;;  %v129_v46 = vld [vmem:[#allocation6 + $0xa0] sm:$0xff]  ;;  %v168_v51 = vsel %vm148_vm2, %v123_v39, 0.0  ;;  %v451_v52 = vcombine.low %v442_v32, %v449_v38  ;;  %v912_v55 = vsel %vm148_vm2, %v125_v40, 0.0 }
  0x41   :  { %674 = vmatpush3.bf16.msra.mxu0 %v719_v8  ;;  %v131_v47 = vld [vmem:[#allocation6 + $0xb0] sm:$0xff]  ;;  %v133_v48 = vld [vmem:[#allocation6 + $0xc0] sm:$0xff]  ;;  %v916_v56 = vsel %vm148_vm2, %v127_v41, 0.0  ;;  %v920_v57 = vsel %vm148_vm2, %v129_v46, 0.0  ;;  %v198_v3 = vsel %vm106_vm0, %v156_v37, 0.0  ;;  %v192_v4 = vrot.slane %v189_v2, 4 }
  0x42   :  { %675 = vmatprep.subr.bf16.mxu0 %v829_v0  ;;  %v135_v53 = vld [vmem:[#allocation6 + $0xd0] sm:$0xff]  ;;  %v137_v54 = vld [vmem:[#allocation6 + $0xe0] sm:$0xff]  ;;  %v922_v59 = vrot.slane %v450_v45, %v427_v12  ;;  %v926_v60 = vsel %vm148_vm2, %v131_v47, 0.0  ;;  %v930_v61 = vsel %vm148_vm2, %v133_v48, 0.0  ;;  %v937_v63 = vrot.slane %v451_v52, %v427_v12 }
  0x43   :  { %v722_v58 = vld [vmem:[#allocation8 + $0x10] sm:$0xff]   ;;  %v934_v62 = vsel %vm148_vm2, %v135_v53, 0.0  ;;  %v941_v1 = vsel %vm148_vm2, %v137_v54, 0.0  ;;  %v201_v5 = vrot.slane %v198_v3, 4  ;;  %v207_v7 = vsel %vm106_vm0, %v158_v42, 0.0  ;;  %v725_v30 = vld [vmem:[#allocation8] sm:$0xff]  }
  0x44   :  { %v216_v8 = vsel %vm106_vm0, %v160_v43, 0.0  ;;  %v466_v9 = vcombine.low %v922_v59, %v937_v63  ;;  %v225_v12 = vsel %vm106_vm0, %v162_v44, 0.0  ;;  %v193_v14 = vadd.f32 %v192_v4, %v189_v2  ;;  %v139_v35 = vld [vmem:[#allocation6 + $0xf0] sm:$0xff] }
  0x45   :  { %676 = vmatpush3.bf16.msra.mxu0 %v720_v10  ;;  %v210_v10 = vrot.slane %v207_v7, 4  ;;  %v219_v11 = vrot.slane %v216_v8, 4  ;;  %v202_v15 = vadd.f32 %v201_v5, %v198_v3  ;;  %v228_v16 = vrot.slane %v225_v12, 4 }
  0x46   :  { %677 = vmatprep.subr.bf16.mxu0 %v829_v0  ;;  %v234_v17 = vsel %vm106_vm0, %v164_v49, 0.0  ;;  %v243_v21 = vsel %vm106_vm0, %v166_v50, 0.0  ;;  %v194_v22 = vrot.slane %v193_v14, 2  ;;  %v252_v29 = vsel %vm106_vm0, %v168_v51, 0.0 }
  0x47   :  { %v211_v18 = vadd.f32 %v210_v10, %v207_v7  ;;  %v220_v19 = vadd.f32 %v219_v11, %v216_v8  ;;  %v203_v23 = vrot.slane %v202_v15, 2  ;;  %v229_v24 = vadd.f32 %v228_v16, %v225_v12 }
  0x48   :  { %v246_v25 = vrot.slane %v243_v21, 4  ;;  %v195_v31 = vadd.f32 %v194_v22, %v193_v14  ;;  %v255_v39 = vrot.slane %v252_v29, 4  ;;  %v184_v48 = vsel %vm148_vm2, %v139_v35, 0.0 }
  0x49   :  { %678 = vmatpush3.bf16.msra.mxu0 %v721_v20  ;;  %v237_v20 = vrot.slane %v234_v17, 4  ;;  %v212_v26 = vrot.slane %v211_v18, 2  ;;  %v221_v27 = vrot.slane %v220_v19, 2  ;;  %v204_v32 = vadd.f32 %v203_v23, %v202_v15 }
  0x4a   :  { %679 = vmatprep.subr.bf16.mxu0 %v829_v0  ;;  %v230_v33 = vrot.slane %v229_v24, 2  ;;  %v247_v34 = vadd.f32 %v246_v25, %v243_v21  ;;  %v196_v40 = vrot.slane %v195_v31, 1  ;;  %v256_v47 = vadd.f32 %v255_v39, %v252_v29 }
  0x4b   :  { %v238_v28 = vadd.f32 %v237_v20, %v234_v17  ;;  %v213_v36 = vadd.f32 %v212_v26, %v211_v18  ;;  %v222_v37 = vadd.f32 %v221_v27, %v220_v19  ;;  %v205_v41 = vrot.slane %v204_v32, 1 }
  0x4c   :  { %v231_v42 = vadd.f32 %v230_v33, %v229_v24  ;;  %v248_v43 = vrot.slane %v247_v34, 2  ;;  %v957_v49 = vadd.f32 %v196_v40, %v195_v31  ;;  %v257_v54 = vrot.slane %v256_v47, 2 }
  0x4d   :  { %680 = vmatpush3.bf16.msra.mxu0 %v722_v58  ;;  %v239_v38 = vrot.slane %v238_v28, 2  ;;  %v214_v44 = vrot.slane %v213_v36, 1  ;;  %v223_v45 = vrot.slane %v222_v37, 1  ;;  %v959_v51 = vadd.f32 %v205_v41, %v204_v32 }
  0x4e   :  { %681 = vmatprep.subr.bf16.mxu0 %v829_v0  ;;  %v249_v50 = vadd.f32 %v248_v43, %v247_v34  ;;  %v261_v63 = vsel %vm106_vm0, %v912_v55, 0.0  ;;  %v270_v6 = vsel %vm106_vm0, %v916_v56, 0.0  ;;  %v258_v3 = vadd.f32 %v257_v54, %v256_v47 }
  0x4f   :  { %v240_v46 = vadd.f32 %v239_v38, %v238_v28  ;;  %v961_v52 = vadd.f32 %v214_v44, %v213_v36  ;;  %v963_v58 = vadd.f32 %v223_v45, %v222_v37  ;;  %v264_v4 = vrot.slane %v261_v63, 4 }
  0x50   :  { %v250_v59 = vrot.slane %v249_v50, 1  ;;  %v273_v5 = vrot.slane %v270_v6, 4  ;;  %v279_v8 = vsel %vm106_vm0, %v920_v57, 0.0  ;;  %v288_v10 = vsel %vm106_vm0, %v926_v60, 0.0 }
  0x51   :  { %682 = vmatpush3.bf16.msra.mxu0 %v723_v13  ;;  %v241_v53 = vrot.slane %v240_v46, 1  ;;  %v297_v55 = vsel %vm106_vm0, %v930_v61, 0.0  ;;  %v265_v56 = vadd.f32 %v264_v4, %v261_v63  ;;  %v282_v12 = vrot.slane %v279_v8, 4 }
  0x52   :  { %683 = vmatprep.subr.bf16.mxu0 %v829_v0  ;;  %v232_v0 = vrot.slane %v231_v42, 1  ;;  %v979_v11 = vadd.f32 %v250_v59, %v249_v50  ;;  %v291_v13 = vrot.slane %v288_v10, 4  ;;  %v300_v14 = vrot.slane %v297_v55, 4 }
  0x53   :  { %v971_v7 = vadd.f32 %v241_v53, %v240_v46  ;;  %v306_v15 = vsel %vm106_vm0, %v934_v62, 0.0  ;;  %v315_v57 = vsel %vm106_vm0, %v941_v1, 0.0  ;;  %v259_v16 = vrot.slane %v258_v3, 1 }
  0x54   :  { %v969_v2 = vadd.f32 %v232_v0, %v231_v42  ;;  %v266_v60 = vrot.slane %v265_v56, 2  ;;  %v283_v18 = vadd.f32 %v282_v12, %v279_v8  ;;  %vm353_vm5 = vcmask 1043459  }
  0x55   :  { %684 = vmatpush3.bf16.msra.mxu0 %v725_v30  ;;  %v292_v61 = vadd.f32 %v291_v13, %v288_v10  ;;  %v301_v19 = vadd.f32 %v300_v14, %v297_v55  ;;  %v309_v20 = vrot.slane %v306_v15, 4  ;;  %v318_v21 = vrot.slane %v315_v57, 4  ;;  %v186_v55 = vld [vmem:[#allocation2] sm:$0xff] }
  0x56   :  { %vm355_vm6 = vcmask 1044484   ;;  %v267_v22 = vadd.f32 %v266_v60, %v265_v56  ;;  %v284_v24 = vrot.slane %v283_v18, 2  ;;  %v324_v25 = vsel %vm106_vm0, %v184_v48, 0.0 }
  0x57   :  { %vm357_vm7 = vcmask 1045509   ;;  %v293_v62 = vrot.slane %v292_v61, 2  ;;  %v302_v26 = vrot.slane %v301_v19, 2  ;;  %v310_v1 = vadd.f32 %v309_v20, %v306_v15 }
  0x58   :  { %686 = vmatmul.mubr.bf16.vlgmr.msra.gmra.mxu0 %v466_v9  ;;  %v274_v9 = vadd.f32 %v273_v5, %v270_v6  ;;  %v319_v27 = vadd.f32 %v318_v21, %v315_v57  ;;  %vm359_vm8 = vcmask 1046534   ;;  %v268_v28 = vrot.slane %v267_v22, 1 }
  0x59   :  { %v285_v30 = vadd.f32 %v284_v24, %v283_v18  ;;  %v327_v31 = vrot.slane %v324_v25, 4  ;;  %v294_v32 = vadd.f32 %v293_v62, %v292_v61  ;;  %v303_v33 = vadd.f32 %v302_v26, %v301_v19 }
  0x5a   :  { %v275_v17 = vrot.slane %v274_v9, 2  ;;  %v311_v34 = vrot.slane %v310_v1, 2  ;;  %v320_v35 = vrot.slane %v319_v27, 2  ;;  %v269_v36 = vadd.f32 %v268_v28, %v267_v22 }
  0x5b   :  { %v286_v38 = vrot.slane %v285_v30, 1  ;;  %v328_v39 = vadd.f32 %v327_v31, %v324_v25  ;;  %v295_v40 = vrot.slane %v294_v32, 1  ;;  %v304_v41 = vrot.slane %v303_v33, 1 }
  0x5c   :  { %v276_v23 = vadd.f32 %v275_v17, %v274_v9  ;;  %v312_v42 = vadd.f32 %v311_v34, %v310_v1  ;;  %v321_v43 = vadd.f32 %v320_v35, %v319_v27  ;;  %v350_v46 = vsel %vm349_vm3, %v959_v51, %v957_v49  ;;  %v187_v9 = vld [vmem:[#allocation2 + $0x8] sm:$0xff] }
  0x5d   :  { %v287_v44 = vadd.f32 %v286_v38, %v285_v30  ;;  %v329_v45 = vrot.slane %v328_v39, 2  ;;  %v296_v48 = vadd.f32 %v295_v40, %v294_v32  ;;  %v305_v0 = vadd.f32 %v304_v41, %v303_v33 }
  0x5e   :  { %v277_v29 = vrot.slane %v276_v23, 1  ;;  %v313_v50 = vrot.slane %v312_v42, 1  ;;  %v322_v53 = vrot.slane %v321_v43, 1  ;;  %v260_v54 = vadd.f32 %v259_v16, %v258_v3 }
  0x5f   :  { %v330_v59 = vadd.f32 %v329_v45, %v328_v39  ;;  %v352_v63 = vsel %vm351_vm4, %v961_v52, %v350_v46  ;;  %vm361_vm9 = vcmask 1047559  }
  0x60   :  { %v278_v37 = vadd.f32 %v277_v29, %v276_v23  ;;  %v314_v4 = vadd.f32 %v313_v50, %v312_v42  ;;  %v323_v5 = vadd.f32 %v322_v53, %v321_v43  ;;  %v354_v8 = vsel %vm353_vm5, %v963_v58, %v352_v63 }
  0x61   :  { %v331_v51 = vrot.slane %v330_v59, 1  ;;  %v356_v10 = vsel %vm355_vm6, %v969_v2, %v354_v8 }
  0x62   :  { %v363_v47 = vsel %vm349_vm3, %v278_v37, %v269_v36  ;;  %v358_v52 = vsel %vm357_vm7, %v971_v7, %v356_v10 }
  0x63   :  { %v364_v6 = vsel %vm351_vm4, %v287_v44, %v363_v47  ;;  %v332_v12 = vadd.f32 %v331_v51, %v330_v59  ;;  %v360_v58 = vsel %vm359_vm8, %v979_v11, %v358_v52  ;;  %v645_v11 = vld [vmem:[%s1018_s4] ss:$0 sm:$0xff] }
  0x64   :  { %v365_v49 = vsel %vm353_vm5, %v296_v48, %v364_v6  ;;  %v362_v14 = vsel %vm361_vm9, %v260_v54, %v360_v58 }
  0x65   :  { %v366_v3 = vsel %vm355_vm6, %v305_v0, %v365_v49  ;;  %v372_v57 = vadd.f32 %v362_v14, %v186_v55 }
  0x66   :  { %v367_v56 = vsel %vm357_vm7, %v314_v4, %v366_v3 }
  0x67   :  { %v368_v13 = vsel %vm359_vm8, %v323_v5, %v367_v56  ;;  %374 = vst.msk [vmem:[#allocation2] sm:$0xff] %vm106_vm0, %v372_v57 }
  0x68   :  { %v369_v15 = vsel %vm361_vm9, %v332_v12, %v368_v13 }
  0x69   :  { %v373_v2 = vadd.f32 %v369_v15, %v187_v9 }
  0x6b   :  { %375 = vst.msk [vmem:[#allocation2 + $0x8] sm:$0xff] %vm106_vm0, %v373_v2 }
  0x6e   :  { %v557_v16 = vld [vmem:[#allocation2] sm:$0xff] }
  0x72   :  { %v558_v60 = vld [vmem:[#allocation2 + $0x8] sm:$0xff] }
  0x73   :  { %v559_v7 = vpack.c.bf16 %v558_v60, %v557_v16 }
  0x75   :  { %694 = vmatmul.mubr.msk.bf16.vlgmr.msra.gmra.mxu1 %vm106_vm0, %v559_v7 }
 0x118   :  { %v550_v17 = vpop.f32.mrf.mxu0 }
 0x119   :  { %v551_v20 = vadd.f32 %v645_v11, %v550_v17 }
 0x11a   :  { %v687_v18 = vpop.f32.mrf.mxu0 }
 0x11c   :  { %v553_v61 = vpop.f32.mrf.mxu0 }
 0x11d   :  { %v554_v23 = vadd.f32 %v645_v11, %v553_v61 }
 0x11e   :  { %v688_v19 = vpop.f32.mrf.mxu0 }
 0x135   :  { %v613_v21 = vpop.f32.mrf.mxu1 }
 0x136   :  { %v620_v22 = vadd.f32 %v613_v21, %v551_v20 }
 0x137   :  { %v695_v24 = vpop.f32.mrf.mxu1 }
 0x138   :  { %622 = vst [vmem:[#allocation11] sm:$0xff] %v620_v22 }
 0x139   :  { %v616_v25 = vpop.f32.mrf.mxu1 }
 0x13a   :  { %v621_v62 = vadd.f32 %v616_v25, %v554_v23 }
 0x13b   :  { %v696_v26 = vpop.f32.mrf.mxu1 }
 0x13c   :  { %623 = vst [vmem:[#allocation11 + $0x8] sm:$0xff] %v621_v62 }
 0x13d   :  { %628 = vsyncadd [#allocation5], 224  ;;  %s832_s24 = smov [#allocation11]  }
 0x13e   :  { %s629_s25 = sshll.u32 %s832_s24, 4  ;;  %s630_s25 = int_to_ptr.vmem [resolvable:$true] %s629_s25 }
 0x13f   :  { %s787_s26 = scalar_lea.vmem %s630_s25, 32  ;;  %s791_s27 = scalar_lea.vmem %s630_s25, 256 }
 0x140   :  { %p788_p1 = scmp.ne.s32.totalorder %s630_s25, %s787_s26  ;;  %p792_p2 = scmp.lt.s32.totalorder %s630_s25, %s630_s25 }
 0x141   :  { %p793_p3 = scmp.lt.s32.totalorder %s791_s27, %s787_s26 }
 0x143   :  { %p794_p4 = por %p793_p3, %p792_p2 }
 0x145   :  { %p795_p5 = pnand %p794_p4, %p788_p1 }
 0x147   :  { %798 = shalt.err (!%p795_p5)
}
 0x148   :  { %s833_s4 = smov 32   ;;  %s834_s28 = smov 2  }
 0x149   :  { %635 = dma.vmem_to_hbm [thread:$0]  %s630_s25, 32, %s1019_s5, [#allocation5], %s833_s4, %s833_s4, %s834_s28  }
 0x14a   :  { %813 = dma.done.wait [#allocation5], 256  }
 0x14b   :  { %814 = vsyncadd [#allocation5], 4294967040 }
 0x14c   :  { %639 = vsyncpa [#allocation4], 1 }
 0x14d   :  { %640 = vsyncpa [#allocation7], 1 }
 0x14e   :  { %641 = vsyncpa [#allocation10], 1 }
 0x14f   :  { %642 = vsyncpa [#allocation5], 1 }

</bundles_post_ra>
